<compile_context>
chip_gen: v5e
topology: v5e:2x2
jax: 0.10.0
libtpu: 0.0.40
codegen_flags: <defaults>
</compile_context>

<pallas_src>
import jax
import jax.numpy as jnp
from jax.experimental import pallas as pl
from jax.experimental.pallas import tpu as pltpu

LANE = 128
SUBLANE = 8


def _round_up(x, m):
    return (x + m - 1) // m * m


def _cdiv(a, b):
    return -(-a // b)


def mlp_kernel(x_ref, w1_ref, b1_ref, w2_ref, b2_ref, w3_ref, b3_ref, o_ref):
    """Fused 3-layer MLP on one batch tile. h1/h2 never touch HBM."""
    # Cast x to the matmul compute dtype in-kernel (free VPU work, saves an
    # extra XLA cast op + HBM pass in the wrapper).
    x = x_ref[...].astype(w1_ref.dtype)
    # fc1 + ReLU (f32 MXU accumulate, f32 elementwise — required on v5e).
    h1 = jnp.dot(x, w1_ref[...], preferred_element_type=jnp.float32)
    h1 = jnp.maximum(h1 + b1_ref[...], 0.0)
    # fc2 + ReLU
    h2 = jnp.dot(h1.astype(w2_ref.dtype), w2_ref[...],
                 preferred_element_type=jnp.float32)
    h2 = jnp.maximum(h2 + b2_ref[...], 0.0)
    # fc3 (no activation)
    out = jnp.dot(h2.astype(w3_ref.dtype), w3_ref[...],
                  preferred_element_type=jnp.float32)
    o_ref[...] = (out + b3_ref[...]).astype(o_ref.dtype)


def pad_params_for_tpu(params, compute_dtype=jnp.bfloat16):
    """Zero-pad feature dims to multiples of 128 (lane-dense). Done once.

    Zero padding is exact: padded hidden units are relu(0 + 0) = 0 and their
    weight rows in the next layer are zero, so they contribute nothing.
    Weights are cast to `compute_dtype` (bf16 recommended on all of
    v5e/v6e/v7x: bf16-native MXU, half the weight DMA/VMEM). Biases stay f32
    for the f32 elementwise path. Input_dims (K of fc1) is deliberately NOT
    padded to 128 — padding K would 16x the x HBM read for zero MXU benefit.
    """
    def pad2(a, rows, cols):
        return jnp.pad(a, ((0, rows - a.shape[0]), (0, cols - a.shape[1])))

    in_dims, f1 = params["w1"].shape
    f2 = params["w2"].shape[1]
    na = params["w3"].shape[1]
    f1p, f2p, nap = (_round_up(d, LANE) for d in (f1, f2, na))

    return {
        "w1": pad2(params["w1"], in_dims, f1p).astype(compute_dtype),
        "b1": pad2(params["b1"], 1, f1p).astype(jnp.float32),
        "w2": pad2(params["w2"], f1p, f2p).astype(compute_dtype),
        "b2": pad2(params["b2"], 1, f2p).astype(jnp.float32),
        "w3": pad2(params["w3"], f2p, nap).astype(compute_dtype),
        "b3": pad2(params["b3"], 1, nap).astype(jnp.float32),
    }


def generic_network_forward(x, padded_params, n_actions, *,
                            block_b=2048,
                            out_dtype=jnp.float32,
                            xla_fallback_max_batch=0):
    """x: [B, input_dims].  padded_params: output of pad_params_for_tpu.

    Returns [B, n_actions] in `out_dtype`. Feed batch-many observations per
    call to amortize the fixed pallas_call cost (the real win for this tiny
    MLP). For tiny acting-path batches set xla_fallback_max_batch ~64 so a
    plain XLA fusion (lower fixed cost) handles them instead of the kernel.
    """
    assert block_b > 0 and block_b % SUBLANE == 0, "block_b must be a positive multiple of 8"

    w1, b1 = padded_params["w1"], padded_params["b1"]
    w2, b2 = padded_params["w2"], padded_params["b2"]
    w3, b3 = padded_params["w3"], padded_params["b3"]

    B, in_dims = x.shape
    nap = w3.shape[1]

    if B <= xla_fallback_max_batch:
        # Tiny batch: pallas_call launch + pad/slice overhead dominates; let XLA fuse it.
        h1 = jnp.maximum(x.astype(w1.dtype) @ w1 + b1, 0.0)
        h2 = jnp.maximum(h1.astype(w2.dtype) @ w2 + b2, 0.0)
        out = h2.astype(w3.dtype) @ w3 + b3
        return out[:, :n_actions].astype(out_dtype)

    # ---- Batch tiling -------------------------------------------------------
    # Round the batch to a sublane multiple, pick an even number of grid steps
    # (keeps both v7x TensorCores busy and balanced; no-op on v5e/v6e), and
    # shrink the tile so it nearly divides the batch — the residual host-side
    # pad is at most a few rows instead of a whole dead tile.
    b8 = _round_up(B, SUBLANE)
    n_steps = max(1, _cdiv(b8, block_b))
    if n_steps > 1 and n_steps % 2:
        n_steps += 1
    tb = _round_up(_cdiv(b8, n_steps), SUBLANE)
    n_steps = _cdiv(b8, tb)
    b_pad = tb * n_steps

    if b_pad != B:
        x = jnp.pad(x, ((0, b_pad - B), (0, 0)))

    grid = (n_steps,)

    def const_spec(a):
        # Constant index_map => weights/biases stay VMEM-resident across steps.
        return pl.BlockSpec(a.shape, lambda i: (0, 0))

    out_padded = pl.pallas_call(
        mlp_kernel,
        out_shape=jax.ShapeDtypeStruct((b_pad, nap), out_dtype),
        grid=grid,
        in_specs=[
            pl.BlockSpec((tb, in_dims), lambda i: (i, 0)),   # activations tiled over batch
            const_spec(w1), const_spec(b1),
            const_spec(w2), const_spec(b2),
            const_spec(w3), const_spec(b3),
        ],
        out_specs=pl.BlockSpec((tb, nap), lambda i: (i, 0)),  # lane-dense (nap % 128 == 0)
        compiler_params=pltpu.CompilerParams(
            dimension_semantics=("parallel",),    # megacore sharding on v7x
            vmem_limit_bytes=32 * 1024 * 1024,    # keep big tiles on v5e's 16 MiB default
        ),
    )(x, w1, b1, w2, b2, w3, b3)

    # Padded rows are bias-only garbage and padded columns are zeros; both are
    # sliced off here. Never consume out_padded directly.
    # TODO(synk): if the consumer is greedy action selection, fuse the argmax
    # into the kernel to remove the 32x-amplified padded-output writeback.
    return out_padded[:B, :n_actions]


def init_params(key, input_dims, fc1_dims, fc2_dims, n_actions):
    """nn.Linear-style U(-1/sqrt(fan_in), +1/sqrt(fan_in)) init."""
    ks = jax.random.split(key, 6)

    def linear(kw, kb, fan_in, fan_out):
        bound = 1.0 / jnp.sqrt(fan_in)
        w = jax.random.uniform(kw, (fan_in, fan_out), jnp.float32, -bound, bound)
        b = jax.random.uniform(kb, (1, fan_out), jnp.float32, -bound, bound)
        return w, b

    w1, b1 = linear(ks[0], ks[1], input_dims, fc1_dims)
    w2, b2 = linear(ks[2], ks[3], fc1_dims, fc2_dims)
    w3, b3 = linear(ks[4], ks[5], fc2_dims, n_actions)
    return {"w1": w1, "b1": b1, "w2": w2, "b2": b2, "w3": w3, "b3": b3}


def _reference(x, params):
    h1 = jnp.maximum(x @ params["w1"] + params["b1"], 0.0)
    h2 = jnp.maximum(h1 @ params["w2"] + params["b2"], 0.0)
    return h2 @ params["w3"] + params["b3"]


if __name__ == "__main__":
    key = jax.random.PRNGKey(0)
    k_obs, k_obs_big, k_params = jax.random.split(key, 3)

    batch = 2
    input_dims = 8
    fc1_dims = 32
    fc2_dims = 32
    n_actions = 4

    params = init_params(k_params, input_dims, fc1_dims, fc2_dims, n_actions)
    # Pad weights once (not per forward call): exact f32 path + fast bf16 path.
    padded_f32 = pad_params_for_tpu(params, compute_dtype=jnp.float32)
    padded_bf16 = pad_params_for_tpu(params, compute_dtype=jnp.bfloat16)

    # --- Small (spec-sized) batch, exact f32 path ---------------------------
    observation = jax.random.normal(k_obs, (batch, input_dims), jnp.float32)
    ref = _reference(observation, params)

    out = generic_network_forward(observation, padded_f32, n_actions)
    out = jax.block_until_ready(out)
    assert out.shape == (batch, n_actions)
    assert jnp.allclose(out, ref, atol=1e-4), "mismatch vs reference (f32, small batch)"

    # Same batch through the bf16 matmul-operand path (precision tradeoff,
    # so a looser tolerance is expected).
    out_bf16 = generic_network_forward(observation, padded_bf16, n_actions,
                                       out_dtype=jnp.bfloat16)
    out_bf16 = jax.block_until_ready(out_bf16)
    assert out_bf16.shape == (batch, n_actions)
    assert jnp.allclose(out_bf16.astype(jnp.float32), ref, atol=5e-2, rtol=5e-2), \
        "mismatch vs reference (bf16, small batch)"

    # --- Larger, non-multiple-of-tile batch: exercises the rebalanced even
    # multi-step grid (block_b=512 -> 4 steps) and the tiny residual row pad.
    big_b = 1203
    obs_big = jax.random.normal(k_obs_big, (big_b, input_dims), jnp.float32)
    ref_big = _reference(obs_big, params)

    out_big_f32 = generic_network_forward(obs_big, padded_f32, n_actions, block_b=512)
    out_big_f32 = jax.block_until_ready(out_big_f32)
    assert out_big_f32.shape == (big_b, n_actions)
    assert jnp.allclose(out_big_f32, ref_big, atol=1e-4), \
        "mismatch vs reference (f32, big batch)"

    out_big_bf16 = generic_network_forward(obs_big, padded_bf16, n_actions,
                                           block_b=512, out_dtype=jnp.bfloat16)
    out_big_bf16 = jax.block_until_ready(out_big_bf16)
    assert out_big_bf16.shape == (big_b, n_actions)
    assert jnp.allclose(out_big_bf16.astype(jnp.float32), ref_big,
                        atol=5e-2, rtol=5e-2), "mismatch vs reference (bf16, big batch)"

    print("KERNEL_OK")
</pallas_src>

<mosaic_0001>
module attributes {stable_mosaic.version = 11 : i64} {
  func.func @mlp_kernel(%arg0: i32, %arg1: memref<8x8xf32, #tpu.memory_space<vmem>>, %arg2: memref<8x128xf32, #tpu.memory_space<vmem>>, %arg3: memref<1x128xf32, #tpu.memory_space<vmem>>, %arg4: memref<128x128xf32, #tpu.memory_space<vmem>>, %arg5: memref<1x128xf32, #tpu.memory_space<vmem>>, %arg6: memref<128x128xf32, #tpu.memory_space<vmem>>, %arg7: memref<1x128xf32, #tpu.memory_space<vmem>>, %arg8: memref<8x128xf32, #tpu.memory_space<vmem>>) attributes {dimension_semantics = [#tpu.dimension_semantics<parallel>], iteration_bounds = array<i64: 1>, scalar_prefetch = 0 : i64, scratch_operands = 0 : i64, tpu.core_type = #tpu.core_type<tc>, window_params = [{transform_indices = @transform_0, window_bounds = array<i64: 8, 8>}, {pipeline_mode = #tpu.pipeline_mode<synchronous>, transform_indices = @transform_1, window_bounds = array<i64: 8, 128>}, {pipeline_mode = #tpu.pipeline_mode<synchronous>, transform_indices = @transform_2, window_bounds = array<i64: 1, 128>}, {pipeline_mode = #tpu.pipeline_mode<synchronous>, transform_indices = @transform_3, window_bounds = array<i64: 128, 128>}, {pipeline_mode = #tpu.pipeline_mode<synchronous>, transform_indices = @transform_4, window_bounds = array<i64: 1, 128>}, {pipeline_mode = #tpu.pipeline_mode<synchronous>, transform_indices = @transform_5, window_bounds = array<i64: 128, 128>}, {pipeline_mode = #tpu.pipeline_mode<synchronous>, transform_indices = @transform_6, window_bounds = array<i64: 1, 128>}, {transform_indices = @transform_7, window_bounds = array<i64: 8, 128>}]} {
    %c0 = arith.constant 0 : index
    %c0_0 = arith.constant 0 : index
    %0 = vector.load %arg1[%c0, %c0_0] : memref<8x8xf32, #tpu.memory_space<vmem>>, vector<8x8xf32>
    %c0_1 = arith.constant 0 : index
    %c0_2 = arith.constant 0 : index
    %1 = vector.load %arg2[%c0_1, %c0_2] : memref<8x128xf32, #tpu.memory_space<vmem>>, vector<8x128xf32>
    %cst = arith.constant dense<0.000000e+00> : vector<8x128xf32>
    %2 = tpu.matmul %0, %1, %cst {dimension_numbers = #tpu.dot_dimension_numbers<[1], [0], [0], [1], [0, 0, 1, 1], [], []>} : vector<8x8xf32>, vector<8x128xf32>, vector<8x128xf32> -> vector<8x128xf32>
    %c0_3 = arith.constant 0 : index
    %c0_4 = arith.constant 0 : index
    %3 = vector.load %arg3[%c0_3, %c0_4] : memref<1x128xf32, #tpu.memory_space<vmem>>, vector<1x128xf32>
    %4 = vector.broadcast %3 : vector<1x128xf32> to vector<8x128xf32>
    %5 = arith.addf %2, %4 : vector<8x128xf32>
    %cst_5 = arith.constant 0.000000e+00 : f32
    %6 = vector.broadcast %cst_5 : f32 to vector<8x128xf32>
    %7 = arith.maximumf %5, %6 : vector<8x128xf32>
    %c0_6 = arith.constant 0 : index
    %c0_7 = arith.constant 0 : index
    %8 = vector.load %arg4[%c0_6, %c0_7] : memref<128x128xf32, #tpu.memory_space<vmem>>, vector<128x128xf32>
    %cst_8 = arith.constant dense<0.000000e+00> : vector<8x128xf32>
    %9 = tpu.matmul %7, %8, %cst_8 {dimension_numbers = #tpu.dot_dimension_numbers<[1], [0], [0], [1], [0, 0, 1, 1], [], []>} : vector<8x128xf32>, vector<128x128xf32>, vector<8x128xf32> -> vector<8x128xf32>
    %c0_9 = arith.constant 0 : index
    %c0_10 = arith.constant 0 : index
    %10 = vector.load %arg5[%c0_9, %c0_10] : memref<1x128xf32, #tpu.memory_space<vmem>>, vector<1x128xf32>
    %11 = vector.broadcast %10 : vector<1x128xf32> to vector<8x128xf32>
    %12 = arith.addf %9, %11 : vector<8x128xf32>
    %cst_11 = arith.constant 0.000000e+00 : f32
    %13 = vector.broadcast %cst_11 : f32 to vector<8x128xf32>
    %14 = arith.maximumf %12, %13 : vector<8x128xf32>
    %c0_12 = arith.constant 0 : index
    %c0_13 = arith.constant 0 : index
    %15 = vector.load %arg6[%c0_12, %c0_13] : memref<128x128xf32, #tpu.memory_space<vmem>>, vector<128x128xf32>
    %cst_14 = arith.constant dense<0.000000e+00> : vector<8x128xf32>
    %16 = tpu.matmul %14, %15, %cst_14 {dimension_numbers = #tpu.dot_dimension_numbers<[1], [0], [0], [1], [0, 0, 1, 1], [], []>} : vector<8x128xf32>, vector<128x128xf32>, vector<8x128xf32> -> vector<8x128xf32>
    %c0_15 = arith.constant 0 : index
    %c0_16 = arith.constant 0 : index
    %17 = vector.load %arg7[%c0_15, %c0_16] : memref<1x128xf32, #tpu.memory_space<vmem>>, vector<1x128xf32>
    %18 = vector.broadcast %17 : vector<1x128xf32> to vector<8x128xf32>
    %19 = arith.addf %16, %18 : vector<8x128xf32>
    %c0_17 = arith.constant 0 : index
    %c0_18 = arith.constant 0 : index
    %20 = vector.load %arg8[%c0_17, %c0_18] : memref<8x128xf32, #tpu.memory_space<vmem>>, vector<8x128xf32>
    tpu.vector_store %arg8[%c0_17, %c0_18], %19 {strides = array<i32>} : memref<8x128xf32, #tpu.memory_space<vmem>>, vector<8x128xf32>,
    return
  }
  func.func @transform_0(%arg0: i32) -> (i32, i32) {
    %c0_i32 = arith.constant 0 : i32
    %c0_i32_0 = arith.constant 0 : i32
    return %arg0, %c0_i32 : i32, i32
  }
  func.func @transform_1(%arg0: i32) -> (i32, i32) {
    %c0_i32 = arith.constant 0 : i32
    %c0_i32_0 = arith.constant 0 : i32
    %c0_i32_1 = arith.constant 0 : i32
    return %c0_i32, %c0_i32_0 : i32, i32
  }
  func.func @transform_2(%arg0: i32) -> (i32, i32) {
    %c0_i32 = arith.constant 0 : i32
    %c0_i32_0 = arith.constant 0 : i32
    %c0_i32_1 = arith.constant 0 : i32
    return %c0_i32, %c0_i32_0 : i32, i32
  }
  func.func @transform_3(%arg0: i32) -> (i32, i32) {
    %c0_i32 = arith.constant 0 : i32
    %c0_i32_0 = arith.constant 0 : i32
    %c0_i32_1 = arith.constant 0 : i32
    return %c0_i32, %c0_i32_0 : i32, i32
  }
  func.func @transform_4(%arg0: i32) -> (i32, i32) {
    %c0_i32 = arith.constant 0 : i32
    %c0_i32_0 = arith.constant 0 : i32
    %c0_i32_1 = arith.constant 0 : i32
    return %c0_i32, %c0_i32_0 : i32, i32
  }
  func.func @transform_5(%arg0: i32) -> (i32, i32) {
    %c0_i32 = arith.constant 0 : i32
    %c0_i32_0 = arith.constant 0 : i32
    %c0_i32_1 = arith.constant 0 : i32
    return %c0_i32, %c0_i32_0 : i32, i32
  }
  func.func @transform_6(%arg0: i32) -> (i32, i32) {
    %c0_i32 = arith.constant 0 : i32
    %c0_i32_0 = arith.constant 0 : i32
    %c0_i32_1 = arith.constant 0 : i32
    return %c0_i32, %c0_i32_0 : i32, i32
  }
  func.func @transform_7(%arg0: i32) -> (i32, i32) {
    %c0_i32 = arith.constant 0 : i32
    %c0_i32_0 = arith.constant 0 : i32
    return %arg0, %c0_i32 : i32, i32
  }
}

</mosaic_0001>

<bundles_post_ra>
// kernel: tpu_custom_call.1
= control target key start
LH: loop header
LB: loop body
LE: loop exit
PB: predicated region body
PF: predicated region fallthrough
CT: control target
= control target key end

     0   :  { %12 = vsyncpa [#allocation3], 0  ;;  %s428_s0 = inlined_call_operand.hbm [shape: f32[8,8], index: 0, kind: input, shape index: {}]   ;;  %s429_s1 = inlined_call_operand.hbm [shape: f32[8,128], index: 1, kind: input, shape index: {}]   ;;  %s430_s2 = inlined_call_operand.vmem [shape: f32[1,128], index: 2, kind: input, shape index: {}]   ;;  %s431_s3 = inlined_call_operand.hbm [shape: f32[128,128], index: 3, kind: input, shape index: {}]   ;;  %s432_s4 = inlined_call_operand.vmem [shape: f32[1,128], index: 4, kind: input, shape index: {}]   ;;  %s433_s5 = inlined_call_operand.hbm [shape: f32[128,128], index: 5, kind: input, shape index: {}]   ;;  %s434_s6 = inlined_call_operand.vmem [shape: f32[1,128], index: 6, kind: input, shape index: {}]   ;;  %s435_s7 = inlined_call_operand.hbm [shape: f32[8,128], index: 7, kind: output, shape index: {}]  }
   0x1   :  { %13 = vsyncpa [#allocation6], 0 }
   0x2   :  { %14 = vsyncpa [#allocation9], 0  ;;  %s32_s26 = sshll.u32 %s429_s1, 4  ;;  %s33_s26 = int_to_ptr.hbm [resolvable:$true] %s32_s26 }
   0x3   :  { %15 = vsyncpa [#allocation4], 0  ;;  %s357_s27 = smov [#allocation5]   ;;  %s21_s8 = sshll.u32 %s428_s0, 4  ;;  %s22_s8 = int_to_ptr.hbm [resolvable:$true] %s21_s8 }
   0x4   :  { %s34_s28 = sshll.u32 %s357_s27, 4  ;;  %s358_s9 = smov [#allocation2]   ;;  %s35_s28 = int_to_ptr.vmem [resolvable:$true] %s34_s28 }
   0x5   :  { %37 = dma.hbm_to_vmem [thread:$0]  %s33_s26, 128, %s35_s28, [#allocation6]  }
   0x6   :  { %s23_s10 = sshll.u32 %s358_s9, 4  ;;  %s44_s13 = sshll.u32 %s431_s3, 4  ;;  %s24_s10 = int_to_ptr.vmem [resolvable:$true] %s23_s10  ;;  %s45_s13 = int_to_ptr.hbm [resolvable:$true] %s44_s13 }
   0x7   :  { %26 = dma.hbm_to_vmem [thread:$0]  %s22_s8, 128, %s24_s10, [#allocation3]  }
   0x8   :  { %s359_s1 = smov [#allocation7]   ;;  %s59_s17 = sshll.u32 %s433_s5, 4  ;;  %s60_s17 = int_to_ptr.hbm [resolvable:$true] %s59_s17 }
   0x9   :  { %s46_s14 = sshll.u32 %s359_s1, 4  ;;  %s360_s18 = smov 128   ;;  %s47_s14 = int_to_ptr.vmem [resolvable:$true] %s46_s14 }
   0xa   :  { %s361_s0 = smov 8   ;;  %s362_s19 = smov [#allocation8]  }
   0xb   :  { %52 = dma.hbm_to_vmem [thread:$0]  %s45_s13, 2048, %s47_s14, [#allocation6], %s360_s18, %s360_s18, %s361_s0  }
   0xc   :  { %s61_s20 = sshll.u32 %s362_s19, 4  ;;  %s62_s20 = int_to_ptr.vmem [resolvable:$true] %s61_s20 }
   0xd   :  { %67 = dma.hbm_to_vmem [thread:$0]  %s60_s17, 2048, %s62_s20, [#allocation9], %s360_s18, %s360_s18, %s361_s0  }
   0xe   :  { %349 = dma.done.wait [#allocation3], 128  }
   0xf   :  { %350 = vsyncadd [#allocation3], 4294967168 }
  0x10   :  { %351 = dma.done.wait [#allocation6], 2176  }
  0x11   :  { %352 = vsyncadd [#allocation6], 4294965120 }
  0x12   :  { %353 = dma.done.wait [#allocation9], 2048  }
  0x13   :  { %354 = vsyncadd [#allocation9], 4294965248  ;;  %vm92_vm0 = vcmask 64512   ;;  %v87_v0 = vld [vmem:[#allocation5] sm:$0xff]  ;;  %v86_v1 = vld [vmem:[#allocation2] sm:$0xff]  ;;  %s363_s24 = smov [#allocation10]  }
  0x14   :  { %v132_v2 = vld [vmem:[#allocation7 + $0x78] sm:$0xff]  ;;  %111 = vmatpush.msra.mxu0 %v87_v0  ;;  %v131_v3 = vld [vmem:[#allocation7 + $0x70] sm:$0xff]  ;;  %v130_v4 = vld [vmem:[#allocation7 + $0x68] sm:$0xff]  ;;  %s204_s25 = sshll.u32 %s363_s24, 4  ;;  %s206_s28 = sshll.u32 %s435_s7, 4  ;;  %s205_s25 = int_to_ptr.vmem [resolvable:$true] %s204_s25  ;;  %s207_s28 = int_to_ptr.hbm [resolvable:$true] %s206_s28 }
  0x15   :  { %137 = vmatpush.msra.mxu1 %v132_v2  ;;  %218 = vmatmul.msk.f32.vlgmr.msra.gmra.mxu0 %vm92_vm0, %v86_v1  ;;  %v129_v5 = vld [vmem:[#allocation7 + $0x60] sm:$0xff]  ;;  %v128_v6 = vld [vmem:[#allocation7 + $0x58] sm:$0xff]  ;;  %v127_v7 = vld [vmem:[#allocation7 + $0x50] sm:$0xff] }
  0x16   :  { %v126_v8 = vld [vmem:[#allocation7 + $0x48] sm:$0xff]  ;;  %v125_v9 = vld [vmem:[#allocation7 + $0x40] sm:$0xff]  ;;  %v124_v10 = vld [vmem:[#allocation7 + $0x38] sm:$0xff] }
  0x17   :  { %138 = vmatpush.msra.mxu1 %v131_v3  ;;  %v123_v11 = vld [vmem:[#allocation7 + $0x30] sm:$0xff]  ;;  %v122_v12 = vld [vmem:[#allocation7 + $0x28] sm:$0xff]  ;;  %v121_v13 = vld [vmem:[#allocation7 + $0x20] sm:$0xff] }
  0x18   :  { %v120_v14 = vld [vmem:[#allocation7 + $0x18] sm:$0xff]  ;;  %v119_v15 = vld [vmem:[#allocation7 + $0x10] sm:$0xff]  ;;  %v118_v16 = vld [vmem:[#allocation7 + $0x8] sm:$0xff] }
  0x19   :  { %139 = vmatpush.msra.mxu1 %v130_v4  ;;  %v117_v17 = vld [vmem:[#allocation7] sm:$0xff]  ;;  %v173_v18 = vld [vmem:[#allocation8 + $0x78] sm:$0xff]  ;;  %v172_v19 = vld [vmem:[#allocation8 + $0x70] sm:$0xff] }
  0x1a   :  { %178 = vmatpush.msra.mxu2 %v173_v18  ;;  %v171_v20 = vld [vmem:[#allocation8 + $0x68] sm:$0xff]  ;;  %v170_v21 = vld [vmem:[#allocation8 + $0x60] sm:$0xff]  ;;  %v169_v22 = vld [vmem:[#allocation8 + $0x58] sm:$0xff] }
  0x1b   :  { %140 = vmatpush.msra.mxu1 %v129_v5  ;;  %v168_v23 = vld [vmem:[#allocation8 + $0x50] sm:$0xff]  ;;  %v167_v24 = vld [vmem:[#allocation8 + $0x48] sm:$0xff]  ;;  %v166_v25 = vld [vmem:[#allocation8 + $0x40] sm:$0xff] }
  0x1c   :  { %179 = vmatpush.msra.mxu2 %v172_v19  ;;  %v165_v26 = vld [vmem:[#allocation8 + $0x38] sm:$0xff]  ;;  %v164_v27 = vld [vmem:[#allocation8 + $0x30] sm:$0xff]  ;;  %v163_v28 = vld [vmem:[#allocation8 + $0x28] sm:$0xff] }
  0x1d   :  { %141 = vmatpush.msra.mxu1 %v128_v6  ;;  %v162_v29 = vld [vmem:[#allocation8 + $0x20] sm:$0xff]  ;;  %v161_v30 = vld [vmem:[#allocation8 + $0x18] sm:$0xff]  ;;  %v226_v31 = vld [vmem:[%s430_s2] ss:$0 sm:$0xff] }
  0x1e   :  { %180 = vmatpush.msra.mxu2 %v171_v20  ;;  %v160_v35 = vld [vmem:[#allocation8 + $0x10] sm:$0xff]  ;;  %v159_v36 = vld [vmem:[#allocation8 + $0x8] sm:$0xff]  ;;  %v158_v37 = vld [vmem:[#allocation8] sm:$0xff] }
  0x1f   :  { %142 = vmatpush.msra.mxu1 %v127_v7  ;;  %v227_v38 = vld [vmem:[%s432_s4] ss:$0 sm:$0xff] }
  0x20   :  { %181 = vmatpush.msra.mxu2 %v170_v21  ;;  %v228_v42 = vld [vmem:[%s434_s6] ss:$0 sm:$0xff] }
  0x21   :  { %143 = vmatpush.msra.mxu1 %v126_v8 }
  0x22   :  { %182 = vmatpush.msra.mxu2 %v169_v22 }
  0x23   :  { %144 = vmatpush.msra.mxu1 %v125_v9 }
  0x24   :  { %183 = vmatpush.msra.mxu2 %v168_v23 }
  0x25   :  { %145 = vmatpush.msra.mxu1 %v124_v10 }
  0x26   :  { %184 = vmatpush.msra.mxu2 %v167_v24 }
  0x27   :  { %146 = vmatpush.msra.mxu1 %v123_v11 }
  0x28   :  { %185 = vmatpush.msra.mxu2 %v166_v25 }
  0x29   :  { %147 = vmatpush.msra.mxu1 %v122_v12 }
  0x2a   :  { %186 = vmatpush.msra.mxu2 %v165_v26 }
  0x2b   :  { %148 = vmatpush.msra.mxu1 %v121_v13 }
  0x2c   :  { %187 = vmatpush.msra.mxu2 %v164_v27 }
  0x2d   :  { %149 = vmatpush.msra.mxu1 %v120_v14 }
  0x2e   :  { %188 = vmatpush.msra.mxu2 %v163_v28 }
  0x2f   :  { %150 = vmatpush.msra.mxu1 %v119_v15 }
  0x30   :  { %189 = vmatpush.msra.mxu2 %v162_v29 }
  0x31   :  { %151 = vmatpush.msra.mxu1 %v118_v16 }
  0x32   :  { %190 = vmatpush.msra.mxu2 %v161_v30 }
  0x33   :  { %152 = vmatpush.msra.mxu1 %v117_v17 }
  0x34   :  { %191 = vmatpush.msra.mxu2 %v160_v35 }
  0x36   :  { %192 = vmatpush.msra.mxu2 %v159_v36 }
  0x38   :  { %193 = vmatpush.msra.mxu2 %v158_v37 }
  0x92   :  { %v113_v32 = vpop.f32.mrf.mxu0 }
  0x93   :  { %v114_v33 = vadd.f32 %v226_v31, %v113_v32 }
  0x95   :  { %v116_v34 = vmax.f32 %v114_v33, 0.0 }
  0x97   :  { %153 = vmatmul.f32.vlgmr.msra.gmra.mxu1 %v116_v34 }
 0x114   :  { %v154_v39 = vpop.f32.mrf.mxu1 }
 0x115   :  { %v155_v40 = vadd.f32 %v227_v38, %v154_v39 }
 0x117   :  { %v157_v41 = vmax.f32 %v155_v40, 0.0 }
 0x119   :  { %194 = vmatmul.f32.vlgmr.msra.gmra.mxu2 %v157_v41 }
 0x19c   :  { %v195_v43 = vpop.f32.mrf.mxu2 }
 0x19d   :  { %v196_v44 = vadd.f32 %v228_v42, %v195_v43 }
 0x19f   :  { %198 = vst [vmem:[#allocation10] sm:$0xff] %v196_v44 }
 0x1a0   :  { %209 = dma.vmem_to_hbm [thread:$0]  %s205_s25, 128, %s207_s28, [#allocation4]  }
 0x1a1   :  { %355 = dma.done.wait [#allocation4], 128  }
 0x1a2   :  { %356 = vsyncadd [#allocation4], 4294967168 }
 0x1a3   :  { %214 = vsyncpa [#allocation3], 1 }
 0x1a4   :  { %215 = vsyncpa [#allocation6], 1 }
 0x1a5   :  { %216 = vsyncpa [#allocation9], 1 }
 0x1a6   :  { %217 = vsyncpa [#allocation4], 1 }

</bundles_post_ra>
